<compile_context>
chip_gen: v6e
topology: v6e:2x2x1
jax: 0.10.0
libtpu: 0.0.40
codegen_flags: <defaults>
</compile_context>

<pallas_src>
import jax
import jax.numpy as jnp
from jax import lax
from jax.experimental import pallas as pl
from jax.experimental.pallas import tpu as pltpu


def _round_up(x, m):
    return ((x + m - 1) // m) * m


def _make_logreg_kernel(input_dim, tk, nk, lane_acc):
    """Kernel body with tiling constants baked in.

    Refs:
      x_ref:   (TB, TK)            VMEM  input rows (lane-dense features)
      w_ref:   (1,  TK)  f32       VMEM  weight row (never transposed)
      b_ref:   (1,)      f32       SMEM  bias scalar
      o_ref:   (TB, 1)             VMEM  output tile (resident across k axis)
      acc_ref: (TB, 128) / (TB, 1) f32   VMEM accumulator scratch
    """

    def kernel(x_ref, w_ref, b_ref, o_ref, acc_ref):
        k = pl.program_id(1)

        @pl.when(k == 0)
        def _init():
            acc_ref[...] = jnp.zeros_like(acc_ref)

        if lane_acc:
            # tk % 128 == 0: per-step work is pure VPU mul/add over 128-lane
            # column groups; the cross-lane reduce waits for the finalize.
            acc = acc_ref[...]
            for c in range(tk // 128):
                lo, hi = c * 128, (c + 1) * 128
                p = (x_ref[:, lo:hi].astype(jnp.float32)
                     * w_ref[:, lo:hi].astype(jnp.float32))
                # Static gate: only groups that can ever cross input_dim
                # (i.e. on the last k step) pay for the lane mask.
                if (nk - 1) * tk + hi > input_dim:
                    col = k * tk + lo + lax.broadcasted_iota(jnp.int32, p.shape, 1)
                    p = jnp.where(col < input_dim, p, 0.0)
                acc = acc + p
            acc_ref[...] = acc
        else:
            # Single k step with tk == input_dim (not a multiple of 128).
            # Chunked 128-lane reduce keeps temporaries small; no tail exists.
            acc = None
            for lo in range(0, tk, 128):
                hi = min(lo + 128, tk)
                s = jnp.sum(x_ref[:, lo:hi].astype(jnp.float32)
                            * w_ref[:, lo:hi].astype(jnp.float32),
                            axis=-1, keepdims=True)
                acc = s if acc is None else acc + s
            acc_ref[...] += acc

        @pl.when(k == nk - 1)
        def _finalize():
            z = acc_ref[...]
            if lane_acc:
                z = jnp.sum(z, axis=-1, keepdims=True)   # single 128->1 reduce
            z = z + b_ref[0]
            o_ref[...] = jax.nn.sigmoid(z).astype(o_ref.dtype)

    return kernel


def logistic_regression_forward(
    x,
    weight,
    bias,
    *,
    k_tile_max=2048,        # max feature chunk per k step (multiple of 128)
    row_tile_max=8192,      # max rows per batch tile
    x_tile_bytes=None,      # per-buffer budget for the x tile (auto if None)
    vmem_limit_bytes=None,  # scoped VMEM limit (auto if None)
):
    """
    Args:
      x:      (batch, input_dim) float32 or bfloat16
      weight: (1, input_dim)     (PyTorch nn.Linear layout)
      bias:   (1,)
    Returns:
      (batch, 1) array of x.dtype: sigmoid(x @ weight.T + bias)
    """
    batch, input_dim = x.shape
    weight = weight.astype(jnp.float32).reshape(1, input_dim)   # tiny
    bias = bias.astype(jnp.float32).reshape((1,))
    itemsize = jnp.dtype(x.dtype).itemsize

    # --- VMEM budget, derived from the chip generation --------------------
    try:
        vmem_cap = pltpu.get_tpu_info().vmem_capacity_bytes
    except Exception:
        vmem_cap = 128 * 1024 * 1024
    if vmem_limit_bytes is None:
        # v7x (64 MiB): 48 MiB scoped limit;  v5e/v6e (128 MiB): 96 MiB.
        vmem_limit_bytes = min(vmem_cap * 3 // 4, 96 * 1024 * 1024)
    if x_tile_bytes is None:
        # Double-buffered x tile + temporaries + scratch must stay under the
        # scoped limit: ~18 MiB tiles on v7x, capped at 32 MiB on v5e/v6e.
        x_tile_bytes = min(32 * 1024 * 1024,
                           max(4 * 1024 * 1024,
                               (vmem_limit_bytes - 12 * 1024 * 1024) // 2))

    # --- feature (reduction) tiling: balanced, no x padding ---------------
    if input_dim <= k_tile_max:
        tk = input_dim          # single k step, full-dim block (no tail)
        nk = 1
    else:
        nk = pl.cdiv(input_dim, k_tile_max)
        tk = _round_up(pl.cdiv(input_dim, nk), 128)
        nk = pl.cdiv(input_dim, tk)
    lane_acc = (tk % 128 == 0)

    # --- batch tiling: balanced, >= 2 tiles so both v7x cores get work ----
    rows_budget = (x_tile_bytes // max(1, tk * itemsize)) // 8 * 8
    rows_budget = max(8, min(rows_budget, row_tile_max))
    if batch <= 8:
        tb = batch                                  # full dim (batch < 8 ok)
    else:
        nb = pl.cdiv(batch, rows_budget)
        if nb == 1 and batch >= 16:
            nb = 2                                  # feed both v7x TensorCores
        tb = min(rows_budget, _round_up(pl.cdiv(batch, nb), 8))
        if tb > batch:                              # keep block within array
            tb = (batch // 8) * 8
    nb = pl.cdiv(batch, tb)

    grid = (nb, nk)
    kernel = _make_logreg_kernel(input_dim, tk, nk, lane_acc)
    acc_shape = (tb, 128) if lane_acc else (tb, 1)

    cost = pl.CostEstimate(
        flops=2 * batch * input_dim,
        transcendentals=batch,
        bytes_accessed=batch * input_dim * itemsize + (input_dim + batch + 1) * 4,
    )

    out = pl.pallas_call(
        kernel,
        out_shape=jax.ShapeDtypeStruct((batch, 1), x.dtype),
        grid_spec=pltpu.PrefetchScalarGridSpec(
            num_scalar_prefetch=0,
            grid=grid,
            in_specs=[
                pl.BlockSpec((tb, tk), lambda i, k: (i, k)),        # x tiles
                pl.BlockSpec((1, tk), lambda i, k: (0, k)),         # weight row
                pl.BlockSpec(memory_space=pltpu.MemorySpace.SMEM),  # bias scalar
            ],
            out_specs=pl.BlockSpec((tb, 1), lambda i, k: (i, 0)),
            scratch_shapes=[pltpu.VMEM(acc_shape, jnp.float32)],
        ),
        compiler_params=pltpu.CompilerParams(
            dimension_semantics=("parallel", "arbitrary"),
            vmem_limit_bytes=vmem_limit_bytes,
        ),
        cost_estimate=cost,
    )(x, weight, bias)

    return out


if __name__ == "__main__":
    key = jax.random.PRNGKey(0)
    kx, kw, kb = jax.random.split(key, 3)

    # Small shapes consistent with nn.Linear(input_dim, 1).
    batch, input_dim = 8, 32
    x = jax.random.normal(kx, (batch, input_dim), dtype=jnp.float32)
    weight = jax.random.normal(kw, (1, input_dim), dtype=jnp.float32) * 0.1
    bias = jax.random.normal(kb, (1,), dtype=jnp.float32) * 0.1

    out = jax.block_until_ready(logistic_regression_forward(x, weight, bias))
    ref = jax.nn.sigmoid(x @ weight.T + bias)
    assert out.shape == (batch, 1)
    assert jnp.allclose(out, ref, atol=1e-5, rtol=1e-5)

    # Second (still small) check: exercises multi-k-step reduction, the
    # in-kernel feature-tail lane mask, and the batch-tail edge block — with
    # no padding copies of x anywhere.
    batch2, input_dim2 = 70, 300
    x2 = jax.random.normal(kx, (batch2, input_dim2), dtype=jnp.float32)
    w2 = jax.random.normal(kw, (1, input_dim2), dtype=jnp.float32) * 0.1
    b2 = jax.random.normal(kb, (1,), dtype=jnp.float32) * 0.1
    out2 = jax.block_until_ready(
        logistic_regression_forward(x2, w2, b2, k_tile_max=128))
    ref2 = jax.nn.sigmoid(x2 @ w2.T + b2)
    assert out2.shape == (batch2, 1)
    assert jnp.allclose(out2, ref2, atol=1e-5, rtol=1e-5)

    print("KERNEL_OK")
</pallas_src>

<mosaic_0001>
module attributes {stable_mosaic.version = 11 : i64} {
  func.func @kernel(%arg0: i32, %arg1: i32, %arg2: memref<8x32xf32, #tpu.memory_space<vmem>>, %arg3: memref<1x32xf32, #tpu.memory_space<vmem>>, %arg4: memref<1xf32, #tpu.memory_space<smem>>, %arg5: memref<8x1xf32, #tpu.memory_space<vmem>>, %arg6: memref<8x1xf32, #tpu.memory_space<vmem>>) attributes {dimension_semantics = [#tpu.dimension_semantics<parallel>, #tpu.dimension_semantics<arbitrary>], iteration_bounds = array<i64: 1, 1>, scalar_prefetch = 0 : i64, scratch_operands = 1 : i64, tpu.core_type = #tpu.core_type<tc>, window_params = [{transform_indices = @transform_0, window_bounds = array<i64: 8, 32>}, {transform_indices = @transform_1, window_bounds = array<i64: 1, 32>}, {transform_indices = @transform_2, window_bounds = array<i64: 1>}, {transform_indices = @transform_3, window_bounds = array<i64: 8, 1>}]} {
    %c0_i32 = arith.constant 0 : i32
    %0 = arith.cmpi eq, %arg1, %c0_i32 : i32
    %1 = arith.extui %0 : i1 to i32
    %c0_i32_0 = arith.constant 0 : i32
    %2 = arith.cmpi ne, %1, %c0_i32_0 : i32
    scf.if %2 {
      %cst_10 = arith.constant 0.000000e+00 : f32
      %15 = vector.broadcast %cst_10 : f32 to vector<8x1xf32>
      %c0_11 = arith.constant 0 : index
      %c0_12 = arith.constant 0 : index
      %16 = vector.load %arg6[%c0_11, %c0_12] : memref<8x1xf32, #tpu.memory_space<vmem>>, vector<8x1xf32>
      tpu.vector_store %arg6[%c0_11, %c0_12], %15 {strides = array<i32>} : memref<8x1xf32, #tpu.memory_space<vmem>>, vector<8x1xf32>,
    } else {
    }
    %c0 = arith.constant 0 : index
    %c0_1 = arith.constant 0 : index
    %3 = vector.load %arg2[%c0, %c0_1] : memref<8x32xf32, #tpu.memory_space<vmem>>, vector<8x32xf32>
    %c0_2 = arith.constant 0 : index
    %c0_3 = arith.constant 0 : index
    %4 = vector.load %arg3[%c0_2, %c0_3] : memref<1x32xf32, #tpu.memory_space<vmem>>, vector<1x32xf32>
    %5 = vector.broadcast %4 : vector<1x32xf32> to vector<8x32xf32>
    %6 = arith.mulf %3, %5 : vector<8x32xf32>
    %cst = arith.constant dense<0.000000e+00> : vector<8xf32>
    %7 = vector.multi_reduction <add>, %6, %cst [1] : vector<8x32xf32> to vector<8xf32>
    %8 = vector.shape_cast %7 : vector<8xf32> to vector<8x1xf32>
    %c0_4 = arith.constant 0 : index
    %c0_5 = arith.constant 0 : index
    %9 = vector.load %arg6[%c0_4, %c0_5] : memref<8x1xf32, #tpu.memory_space<vmem>>, vector<8x1xf32>
    %10 = arith.addf %9, %8 : vector<8x1xf32>
    %c0_6 = arith.constant 0 : index
    %c0_7 = arith.constant 0 : index
    %11 = vector.load %arg6[%c0_6, %c0_7] : memref<8x1xf32, #tpu.memory_space<vmem>>, vector<8x1xf32>
    tpu.vector_store %arg6[%c0_6, %c0_7], %10 {strides = array<i32>} : memref<8x1xf32, #tpu.memory_space<vmem>>, vector<8x1xf32>,
    %c0_i32_8 = arith.constant 0 : i32
    %12 = arith.cmpi eq, %arg1, %c0_i32_8 : i32
    %13 = arith.extui %12 : i1 to i32
    %c0_i32_9 = arith.constant 0 : i32
    %14 = arith.cmpi ne, %13, %c0_i32_9 : i32
    scf.if %14 {
      %c0_10 = arith.constant 0 : index
      %c0_11 = arith.constant 0 : index
      %15 = vector.load %arg6[%c0_10, %c0_11] : memref<8x1xf32, #tpu.memory_space<vmem>>, vector<8x1xf32>
      %c0_12 = arith.constant 0 : index
      %16 = memref.load %arg4[%c0_12] : memref<1xf32, #tpu.memory_space<smem>>
      %17 = vector.broadcast %16 : f32 to vector<8x1xf32>
      %18 = arith.addf %15, %17 : vector<8x1xf32>
      %19 = arith.negf %18 : vector<8x1xf32>
      %20 = math.exp %19 : vector<8x1xf32>
      %cst_13 = arith.constant 1.000000e+00 : f32
      %21 = vector.broadcast %cst_13 : f32 to vector<8x1xf32>
      %22 = arith.addf %21, %20 : vector<8x1xf32>
      %23 = arith.divf %21, %22 : vector<8x1xf32>
      %c0_14 = arith.constant 0 : index
      %c0_15 = arith.constant 0 : index
      %24 = vector.load %arg5[%c0_14, %c0_15] : memref<8x1xf32, #tpu.memory_space<vmem>>, vector<8x1xf32>
      tpu.vector_store %arg5[%c0_14, %c0_15], %23 {strides = array<i32>} : memref<8x1xf32, #tpu.memory_space<vmem>>, vector<8x1xf32>,
    } else {
    }
    return
  }
  func.func @transform_0(%arg0: i32, %arg1: i32) -> (i32, i32) {
    %c0_i32 = arith.constant 0 : i32
    return %arg0, %arg1 : i32, i32
  }
  func.func @transform_1(%arg0: i32, %arg1: i32) -> (i32, i32) {
    %c0_i32 = arith.constant 0 : i32
    %c0_i32_0 = arith.constant 0 : i32
    return %c0_i32, %arg1 : i32, i32
  }
  func.func @transform_2(%arg0: i32, %arg1: i32) -> i32 {
    %c0_i32 = arith.constant 0 : i32
    %c0_i32_0 = arith.constant 0 : i32
    return %c0_i32 : i32
  }
  func.func @transform_3(%arg0: i32, %arg1: i32) -> (i32, i32) {
    %c0_i32 = arith.constant 0 : i32
    %c0_i32_0 = arith.constant 0 : i32
    return %arg0, %c0_i32 : i32, i32
  }
}

</mosaic_0001>

<bundles_post_ra>
// kernel: tpu_custom_call.1
= control target key start
LH: loop header
LB: loop body
LE: loop exit
PB: predicated region body
PF: predicated region fallthrough
CT: control target
= control target key end

     0   :  { %9 = vsyncpa [#allocation5], 0  ;;  %s99_s12 = smov [#allocation4]   ;;  %s136_s0 = inlined_call_operand.hbm [shape: f32[8,32], index: 0, kind: input, shape index: {}]   ;;  %s137_s1 = inlined_call_operand.vmem [shape: f32[1,32], index: 1, kind: input, shape index: {}]   ;;  %s138_s2 = inlined_call_operand.<no memory space> [shape: f32[1], index: 2, kind: input, shape index: {}]   ;;  %s139_s3 = inlined_call_operand.vmem [shape: f32[8,1], index: 3, kind: output, shape index: {}]  }
   0x1   :  { %s16_s13 = sshll.u32 %s99_s12, 4  ;;  %s17_s13 = int_to_ptr.vmem [resolvable:$true] %s16_s13 }
   0x2   :  { %s85_s14 = scalar_lea.vmem %s17_s13, 128  ;;  %p90_p1 = scmp.lt.s32.totalorder %s17_s13, %s17_s13 }
   0x3   :  { %p86_p0 = scmp.ne.s32.totalorder %s17_s13, %s85_s14  ;;  %p91_p2 = scmp.lt.s32.totalorder %s85_s14, %s85_s14 }
   0x5   :  { %p92_p3 = por %p91_p2, %p90_p1 }
   0x7   :  { %p93_p4 = pnand %p92_p3, %p86_p0 }
   0x9   :  { %96 = shalt.err (!%p93_p4)
}
   0xa   :  { %19 = dma.hbm_to_vmem [thread:$0]  %s136_s0, 128, %s17_s13, [#allocation5]  }
   0xb   :  { %97 = dma.done.wait [#allocation5], 128  }
   0xc   :  { %98 = vsyncadd [#allocation5], 4294967168  ;;  %vm31_vm0 = vcmask 7168   ;;  %v100_v0 = vmov 0.0   ;;  %v33_v1 = vld [vmem:[#allocation4] sm:$0xff]  ;;  %vm42_vm1 = vcmask 261120   ;;  %v55_v8 = vstv %s138_s2 }
   0xd   :  { %32 = vst.msk [vmem:[#allocation2] sm:$0xff] %vm31_vm0, %v100_v0  ;;  %v69_v2 = vld [vmem:[%s137_s1] ss:$0 sm:$0xff] }
   0xe   :  { %v41_v3 = vmul.f32 %v69_v2, %v33_v1 }
  0x10   :  { %v43_v4 = vsel %vm42_vm1, %v41_v3, 0.0 }
  0x11   :  { %44 = vadd.xlane.f32.xlu0 %v43_v4 }
  0x14   :  { %v46_v5 = vld [vmem:[#allocation2] sm:$0xff] }
  0x9a   :  { %v45_v6 = vpop.xlane.xlu0 %44 }
  0x9b   :  { %v47_v7 = vadd.f32 %v46_v5, %v45_v6 }
  0x9d   :  { %49 = vst.msk [vmem:[#allocation2] sm:$0xff] %vm31_vm0, %v47_v7 }
  0xa4   :  { %v53_v9 = vld [vmem:[#allocation2] sm:$0xff] }
  0xa5   :  { %v56_v10 = vadd.f32 %v55_v8, %v53_v9 }
  0xa7   :  { %v70_v11 = vmul.f32 -1.442695, %v56_v10 }
  0xa9   :  { %73 = vpow2.f32 %v70_v11 }
  0xb6   :  { %v74_v12 = vpop.eup %73 }
  0xb7   :  { %v60_v13 = vadd.f32 1.0, %v74_v12 }
  0xb9   :  { %75 = vrcp.f32 %v60_v13 }
  0xc6   :  { %v76_v14 = vpop.eup %75 }
  0xc7   :  { %63 = vst.msk [vmem:[%s139_s3] sm:$0xff] %vm31_vm0, %v76_v14 }
  0xc8   :  { %68 = vsyncpa [#allocation5], 1 }

</bundles_post_ra>
